<compile_context>
chip_gen: v7x
topology: tpu7x:2x2x1
jax: 0.10.0
libtpu: 0.0.40
codegen_flags: <defaults>
</compile_context>

<pallas_src>
import jax
import jax.numpy as jnp
from jax import lax
from jax.experimental import pallas as pl
from jax.experimental.pallas import tpu as pltpu


def _one_hot_kernel(ids_ref, mask_ref, out_ref):
    # ids_ref:  (TL, 1)  int32    -- token ids for this row tile
    # mask_ref: (TL, 1)  f32/bf16 -- attention mask for this row tile
    # out_ref:  (TL, TV) f32/bf16 -- one (row, vocab) tile of the one-hot output
    TL, TV = out_ref.shape
    v_off = pl.program_id(1) * TV                                  # vocab tile offset
    iota = lax.broadcasted_iota(jnp.int32, (TL, TV), 1) + v_off    # (TL, TV)
    zero = jnp.zeros((), dtype=out_ref.dtype)
    # single cmp + select; mask broadcasts over the lane (vocab) axis
    out_ref[...] = jnp.where(ids_ref[...] == iota, mask_ref[...], zero)


def one_hot_model_forward(input_ids, attention_mask=None, *, vocab_size,
                          out_dtype=jnp.float32):
    """input_ids: [B, L] int, attention_mask: optional [B, L].
    Returns [B, L, vocab_size] of `out_dtype` (float32 by default)."""
    B, L = input_ids.shape
    V = vocab_size
    R = B * L

    ids = input_ids.astype(jnp.int32).reshape(R, 1)
    if attention_mask is None:
        mask = jnp.ones((R, 1), dtype=out_dtype)
    else:
        mask = attention_mask.astype(out_dtype).reshape(R, 1)

    dtype_bytes = jnp.dtype(out_dtype).itemsize

    # --- tile selection ------------------------------------------------------
    # vocab (lane) tile: multiple of 128 for unmasked lane-dense stores,
    # capped at 4096 lanes.
    if V >= 128:
        TV = min(4096, (V // 128) * 128)
    else:
        TV = V                      # full extent (legal when < one lane tile)

    # row (sublane) tile: multiple of 8, sized so one output tile is ~4 MiB
    # (double-buffered 8 MiB) -- bigger tiles amortize the ~0.35 us/step cost
    # and keep the writeback at the HBM roofline.
    if R >= 8:
        budget_bytes = 4 * 1024 * 1024
        tl = budget_bytes // max(TV * dtype_bytes, 1)
        tl = max(8, (tl // 8) * 8)
        TL = min((R // 8) * 8, tl)
    else:
        TL = R                      # full extent

    grid = (pl.cdiv(R, TL), pl.cdiv(V, TV))

    out2d = pl.pallas_call(
        _one_hot_kernel,
        out_shape=jax.ShapeDtypeStruct((R, V), out_dtype),
        grid_spec=pltpu.PrefetchScalarGridSpec(
            num_scalar_prefetch=0,
            grid=grid,
            in_specs=[
                # index_map constant along the vocab (inner) axis -> inputs
                # stay resident instead of being re-DMAed per vocab tile.
                pl.BlockSpec((TL, 1), lambda l, v: (l, 0)),
                pl.BlockSpec((TL, 1), lambda l, v: (l, 0)),
            ],
            out_specs=pl.BlockSpec((TL, TV), lambda l, v: (l, v)),
        ),
        compiler_params=pltpu.CompilerParams(
            dimension_semantics=("parallel", "parallel"),
        ),
    )(ids, mask)

    return out2d.reshape(B, L, V)


if __name__ == "__main__":
    key = jax.random.PRNGKey(0)
    k_ids, k_ids2 = jax.random.split(key)

    # --- test 1: small shapes consistent with the module (B=2, L=8, vocab=32)
    B, L, VOCAB = 2, 8, 32
    input_ids = jax.random.randint(k_ids, (B, L), 0, VOCAB, dtype=jnp.int32)
    attention_mask = jnp.ones((B, L), dtype=jnp.float32).at[1, -2:].set(0.0)

    out = jax.block_until_ready(
        one_hot_model_forward(input_ids, attention_mask, vocab_size=VOCAB))
    ref = jax.nn.one_hot(input_ids, VOCAB, dtype=jnp.float32) * attention_mask[..., None]
    assert out.shape == (B, L, VOCAB)
    assert out.dtype == jnp.float32
    assert jnp.array_equal(out, ref), "test1: mismatch vs reference one-hot"

    # --- test 2: non-divisible rows/vocab to exercise partial tiles + iota offset
    B2, L2, V2 = 2, 136, 160     # R=272 -> row tiles; V=160 -> 2 vocab tiles
    ids2 = jax.random.randint(k_ids2, (B2, L2), 0, V2, dtype=jnp.int32)
    out2 = jax.block_until_ready(one_hot_model_forward(ids2, None, vocab_size=V2))
    ref2 = jax.nn.one_hot(ids2, V2, dtype=jnp.float32)
    assert out2.shape == (B2, L2, V2)
    assert jnp.array_equal(out2, ref2), "test2: mismatch vs reference one-hot"

    print("KERNEL_OK")
</pallas_src>

<mosaic_0001>
module attributes {stable_mosaic.version = 11 : i64} {
  func.func @_one_hot_kernel(%arg0: i32, %arg1: i32, %arg2: memref<16x1xi32, #tpu.memory_space<vmem>>, %arg3: memref<16x1xf32, #tpu.memory_space<vmem>>, %arg4: memref<16x32xf32, #tpu.memory_space<vmem>>) attributes {dimension_semantics = [#tpu.dimension_semantics<parallel>, #tpu.dimension_semantics<parallel>], iteration_bounds = array<i64: 1, 1>, scalar_prefetch = 0 : i64, scratch_operands = 0 : i64, tpu.core_type = #tpu.core_type<tc>, window_params = [{transform_indices = @transform_0, window_bounds = array<i64: 16, 1>}, {transform_indices = @transform_1, window_bounds = array<i64: 16, 1>}, {transform_indices = @transform_2, window_bounds = array<i64: 16, 32>}]} {
    %c32_i32 = arith.constant 32 : i32
    %0 = arith.muli %arg1, %c32_i32 : i32
    %1 = tpu.iota {dimensions = array<i32: 1>} : vector<16x32xi32>
    %2 = vector.broadcast %0 : i32 to vector<16x32xi32>
    %3 = arith.addi %1, %2 : vector<16x32xi32>
    %c0 = arith.constant 0 : index
    %c0_0 = arith.constant 0 : index
    %4 = vector.load %arg2[%c0, %c0_0] : memref<16x1xi32, #tpu.memory_space<vmem>>, vector<16x1xi32>
    %5 = vector.broadcast %4 : vector<16x1xi32> to vector<16x32xi32>
    %6 = arith.cmpi eq, %5, %3 : vector<16x32xi32>
    %c0_1 = arith.constant 0 : index
    %c0_2 = arith.constant 0 : index
    %7 = vector.load %arg3[%c0_1, %c0_2] : memref<16x1xf32, #tpu.memory_space<vmem>>, vector<16x1xf32>
    %cst = arith.constant 0.000000e+00 : f32
    %8 = vector.shape_cast %7 : vector<16x1xf32> to vector<16x1xf32>
    %9 = vector.broadcast %8 : vector<16x1xf32> to vector<16x32xf32>
    %10 = vector.broadcast %cst : f32 to vector<16x32xf32>
    %11 = arith.select %6, %9, %10 : vector<16x32xi1>, vector<16x32xf32>
    %c0_3 = arith.constant 0 : index
    %c0_4 = arith.constant 0 : index
    %12 = vector.load %arg4[%c0_3, %c0_4] : memref<16x32xf32, #tpu.memory_space<vmem>>, vector<16x32xf32>
    tpu.vector_store %arg4[%c0_3, %c0_4], %11 {strides = array<i32>} : memref<16x32xf32, #tpu.memory_space<vmem>>, vector<16x32xf32>,
    return
  }
  func.func @transform_0(%arg0: i32, %arg1: i32) -> (i32, i32) {
    %c0_i32 = arith.constant 0 : i32
    %c0_i32_0 = arith.constant 0 : i32
    return %arg0, %c0_i32 : i32, i32
  }
  func.func @transform_1(%arg0: i32, %arg1: i32) -> (i32, i32) {
    %c0_i32 = arith.constant 0 : i32
    %c0_i32_0 = arith.constant 0 : i32
    return %arg0, %c0_i32 : i32, i32
  }
  func.func @transform_2(%arg0: i32, %arg1: i32) -> (i32, i32) {
    %c0_i32 = arith.constant 0 : i32
    return %arg0, %arg1 : i32, i32
  }
}

</mosaic_0001>

<bundles_post_ra>
// kernel: tpu_custom_call.1
= control target key start
LH: loop header
LB: loop body
LE: loop exit
PB: predicated region body
PF: predicated region fallthrough
CT: control target
= control target key end

     0   :  { %v90_v2 = vmov 0   ;;  %s133_s0 = inlined_call_operand.vmem [shape: s32[16,1], index: 0, kind: input, shape index: {}]   ;;  %s134_s1 = inlined_call_operand.vmem [shape: f32[16,1], index: 1, kind: input, shape index: {}]   ;;  %s135_s2 = inlined_call_operand.hbm [shape: f32[16,32], index: 2, kind: output, shape index: {}]  }
   0x1   :  { %v27_v0 = vld [vmem:[%s134_s1] sm:$0xff]  ;;  %65 = vset.pattern.permute.xlu1 %v90_v2  ;;  %64 = vset.pattern.permute.xlu0 %v90_v2 }
   0x2   :  { %v17_v1 = vld [vmem:[%s133_s0] sm:$0xff] }
   0x3   :  { %7 = vsyncpa [#allocation3], 0  ;;  %31 = vperm.xlu1 %65, %v27_v0   ;;  %20 = vperm.xlu0 %64, %v17_v1   ;;  %v28_v3 = vld [vmem:[%s134_s1 + $0x8] sm:$0xff]  ;;  %v13_v5 = vlaneseq  ;;  %vm41_vm0 = vcmask 261120   ;;  %s91_s17 = smov [#allocation2]  }
   0x4   :  { %v18_v4 = vld [vmem:[%s133_s0 + $0x8] sm:$0xff]  ;;  %s49_s18 = sshll.u32 %s91_s17, 4  ;;  %s50_s18 = int_to_ptr.vmem [resolvable:$true] %s49_s18 }
   0x5   :  { %v14_v6 = vand.u32 127, %v13_v5  ;;  %s66_s1 = scalar_lea.vmem %s50_s18, 256  ;;  %p71_p1 = scmp.lt.s32.totalorder %s50_s18, %s50_s18 }
   0x6   :  { %p67_p0 = scmp.ne.s32.totalorder %s50_s18, %s66_s1  ;;  %p72_p2 = scmp.lt.s32.totalorder %s66_s1, %s66_s1 }
   0x7   :  { %36 = vperm.xlu1 %65, %v28_v3   ;;  %23 = vperm.xlu0 %64, %v18_v4  }
   0x8   :  { %p73_p3 = por %p72_p2, %p71_p1 }
   0xa   :  { %p74_p4 = pnand %p73_p3, %p67_p0 }
  0x82   :  { %v32_v7 = vpop.permute.xlu1 %31  ;;  %v21_v8 = vpop.permute.xlu0 %20 }
  0x83   :  { %vm25_vm1 = vcmp.eq.s32.totalorder %v21_v8, %v14_v6 }
  0x84   :  { %v39_v9 = vsel %vm25_vm1, %v32_v7, 0.0 }
  0x85   :  { %42 = vst.msk [vmem:[#allocation2] sm:$0xff] %vm41_vm0, %v39_v9 }
  0x86   :  { %v37_v10 = vpop.permute.xlu1 %36  ;;  %v24_v11 = vpop.permute.xlu0 %23 }
  0x87   :  { %vm26_vm2 = vcmp.eq.s32.totalorder %v24_v11, %v14_v6 }
  0x88   :  { %v40_v12 = vsel %vm26_vm2, %v37_v10, 0.0 }
  0x89   :  { %43 = vst.msk [vmem:[#allocation2 + $0x8] sm:$0xff] %vm41_vm0, %v40_v12 }
  0x8a   :  { %77 = shalt.err (!%p74_p4)
}
  0x8b   :  { %s78_s20 = scalar_lea.hbm %s135_s2, 256 }
  0x8c   :  { %p79_p5 = scmp.ne.s32.totalorder %s135_s2, %s78_s20  ;;  %p82_p6 = scmp.lt.u32.totalorder %s78_s20, %s135_s2 }
  0x8e   :  { %p84_p7 = pnand %p82_p6, %p79_p5 }
  0x90   :  { %87 = shalt.err (!%p84_p7)
}
  0x91   :  { %s92_s25 = smov 128   ;;  %s93_s26 = smov 8  }
  0x92   :  { %55 = dma.vmem_to_hbm [thread:$0]  %s50_s18, 256, %s135_s2, [#allocation3], %s92_s25, %s92_s25, %s93_s26  }
  0x93   :  { %88 = dma.done.wait [#allocation3], 256  }
  0x94   :  { %89 = vsyncadd [#allocation3], 4294967040 }
  0x95   :  { %59 = vsyncpa [#allocation3], 1 }

</bundles_post_ra>
